<compile_context>
chip_gen: v6e
topology: v6e:2x2x1
jax: 0.10.0
libtpu: 0.0.40
codegen_flags: <defaults>
</compile_context>

<pallas_src>
import jax
import jax.numpy as jnp
from jax import lax
from jax.experimental import pallas as pl
from jax.experimental.pallas import tpu as pltpu


def compute_pos_emb(head_dim, base, max_len):
    """Mirrors RotaryEmbedding.compute_pos_emb (including the sin/cos name swap)."""
    theta_i = 1.0 / (base ** (jnp.arange(0, head_dim, 2, dtype=jnp.float32) / head_dim))
    positions = jnp.arange(max_len, dtype=jnp.float32)
    pos_emb = positions[:, None] * theta_i[None, :]                  # (max_len, head_dim//2)
    cos_pos = jnp.repeat(jnp.sin(pos_emb), 2, axis=-1)               # (max_len, head_dim)
    sin_pos = jnp.repeat(jnp.cos(pos_emb), 2, axis=-1)               # (max_len, head_dim)
    return cos_pos, sin_pos


def fold_sign_tables(cos_pos, sin_pos):
    """Parity/sign-folded tables so the kernel needs no iota/mod/select per step."""
    head_dim = cos_pos.shape[-1]
    even = (jnp.arange(head_dim) % 2) == 0                           # (head_dim,)
    sin_even = jnp.where(even[None, :], -sin_pos, 0.0)               # multiplies q[..., j+1]
    sin_odd = jnp.where(even[None, :], 0.0, sin_pos)                 # multiplies q[..., j-1]
    return (cos_pos.astype(jnp.float32),
            sin_even.astype(jnp.float32),
            sin_odd.astype(jnp.float32))


def rope_kernel(q_ref, cos_ref, se_ref, so_ref, o_ref):
    # q_ref/o_ref: (TB, TS, Df); cos/se/so refs: (TS, Df) float32.
    tb = q_ref.shape[0]
    df = q_ref.shape[-1]
    use_xlu_roll = (df % 128 == 0)                 # static, decided at trace time

    # Hoisted once per grid step; same (TS, Df) shape as each row slab -> no broadcasts.
    cos = cos_ref[...]
    se = se_ref[...]
    so = so_ref[...]

    def body(b, carry):
        qb = q_ref[b].astype(jnp.float32)          # (TS, Df)
        if use_xlu_roll:
            # XLU lane rotation (free slot relative to VALU); non-negative static shifts.
            q_prev = pltpu.roll(qb, shift=1, axis=1)        # q_prev[..., j] = qb[..., j-1]
            q_next = pltpu.roll(qb, shift=df - 1, axis=1)   # q_next[..., j] = qb[..., j+1]
        else:
            q_prev = jnp.roll(qb, shift=1, axis=1)
            q_next = jnp.roll(qb, shift=-1, axis=1)
        o_ref[b] = (qb * cos + q_next * se + q_prev * so).astype(o_ref.dtype)
        return carry

    lax.fori_loop(0, tb, body, 0, unroll=(tb <= 8))


def _largest_divisor_leq(n, bound):
    bound = max(1, min(n, bound))
    for d in range(bound, 0, -1):
        if n % d == 0:
            return d
    return 1


def _choose_fold(seq_len, head_dim):
    """Number of consecutive positions P folded into the lane axis.

    Prefer Df = P*head_dim to be a multiple of 128 (lane-dense stores), capped at
    1024 lanes; otherwise fall back to the widest Df <= 512.
    """
    best_aligned = 0
    best_any = 1
    for p in range(1, seq_len + 1):
        if seq_len % p:
            continue
        df = p * head_dim
        if df % 128 == 0 and df <= 1024:
            best_aligned = p
        if df <= 512:
            best_any = p
    return best_aligned if best_aligned else best_any


def _choose_seq_tile(sf, df, itemsize, target_bytes):
    """Seq-block size TS (divides Sf). Full Sf if it fits; else prefer a multiple of 8."""
    max_ts = max(1, target_bytes // (df * itemsize))
    if sf <= max_ts:
        return sf
    best8 = 0
    for d in range(1, max_ts + 1):
        if sf % d == 0 and d % 8 == 0:
            best8 = d
    if best8:
        return best8
    return _largest_divisor_leq(sf, max_ts)


def rotary_forward(q, cos_f32, sin_even, sin_odd, *, target_block_bytes=4 << 20):
    bs, nh, seq_len, head_dim = q.shape
    assert seq_len <= cos_f32.shape[0], "seq_len exceeds max_len of precomputed tables"
    assert head_dim % 2 == 0, "RoPE requires an even head_dim"
    rows = bs * nh
    itemsize = q.dtype.itemsize

    # Fold consecutive seq positions into the lane axis (lane-dense last dim).
    P = _choose_fold(seq_len, head_dim)
    Sf = seq_len // P
    Df = P * head_dim

    qf = q.reshape(rows, Sf, Df)
    cos = cos_f32[:seq_len].reshape(Sf, Df)
    se = sin_even[:seq_len].reshape(Sf, Df)
    so = sin_odd[:seq_len].reshape(Sf, Df)

    # Tile the seq axis (bounds VMEM independently of seq_len), then pick rows/step
    # so the q block is ~target_block_bytes.
    TS = _choose_seq_tile(Sf, Df, itemsize, target_block_bytes)
    max_tb = max(1, target_block_bytes // (TS * Df * itemsize))
    TB = _largest_divisor_leq(rows, max_tb)

    # Seq axis outermost: table block index is constant across the inner row axis,
    # so Pallas fetches each table block only once per seq block.
    grid = (Sf // TS, rows // TB)

    # VMEM budget from the real footprint (double-buffered in/out q blocks + tables),
    # kept well under the 64 MiB physical VMEM of v7x.
    q_block_bytes = TB * TS * Df * itemsize
    tbl_block_bytes = TS * Df * 4
    footprint = 4 * q_block_bytes + 2 * 3 * tbl_block_bytes
    vmem_limit = int(min(max(32 << 20, footprint + (4 << 20)), 48 << 20))

    cost = pl.CostEstimate(
        flops=5 * q.size,
        transcendentals=0,
        bytes_accessed=2 * q.size * itemsize + 3 * seq_len * head_dim * 4,
    )

    out = pl.pallas_call(
        rope_kernel,
        out_shape=jax.ShapeDtypeStruct((rows, Sf, Df), q.dtype),
        grid=grid,
        in_specs=[
            pl.BlockSpec((TB, TS, Df), lambda s, i: (i, s, 0)),
            pl.BlockSpec((TS, Df), lambda s, i: (s, 0)),
            pl.BlockSpec((TS, Df), lambda s, i: (s, 0)),
            pl.BlockSpec((TS, Df), lambda s, i: (s, 0)),
        ],
        out_specs=pl.BlockSpec((TB, TS, Df), lambda s, i: (i, s, 0)),
        compiler_params=pltpu.CompilerParams(
            dimension_semantics=("parallel", "parallel"),
            vmem_limit_bytes=vmem_limit,
        ),
        cost_estimate=cost,
    )(qf, cos, se, so)
    return out.reshape(bs, nh, seq_len, head_dim)


class RotaryEmbedding:
    def __init__(self, hidden_size, num_heads, base=10000, max_len=512):
        assert hidden_size % num_heads == 0
        self.head_dim = hidden_size // num_heads
        assert self.head_dim % 2 == 0, "RoPE requires an even head_dim"
        self.hidden_size = hidden_size
        self.num_heads = num_heads
        self.base = base
        self.max_len = max_len
        self.cos_pos, self.sin_pos = compute_pos_emb(self.head_dim, base, max_len)
        self._cos_f32, self._sin_even, self._sin_odd = fold_sign_tables(
            self.cos_pos, self.sin_pos)

    def __call__(self, q):
        assert q.shape[-1] == self.head_dim
        assert q.shape[2] <= self.max_len, "seq_len exceeds max_len"
        return rotary_forward(q, self._cos_f32, self._sin_even, self._sin_odd)


def _reference(q, cos_pos, sin_pos):
    """Pure-JAX replica of the PyTorch forward for verification."""
    seq_len = q.shape[2]
    cos = cos_pos[:seq_len][None, None, :, :]
    sin = sin_pos[:seq_len][None, None, :, :]
    q2 = jnp.stack([-q[..., 1::2], q[..., 0::2]], axis=-1).reshape(q.shape)
    return q * cos + q2 * sin


if __name__ == "__main__":
    key0, key1 = jax.random.split(jax.random.PRNGKey(0))

    # Case 1: the module's small shapes (head_dim=8 -> Df=64, unaligned fallback path).
    rope = RotaryEmbedding(hidden_size=32, num_heads=4, base=10000, max_len=512)
    q = jax.random.normal(key0, (2, 4, 8, rope.head_dim), dtype=jnp.float32)
    out = rope(q)
    jax.block_until_ready(out)
    ref = _reference(q, rope.cos_pos, rope.sin_pos)
    assert out.shape == q.shape and out.dtype == q.dtype
    assert jnp.allclose(out, ref, atol=1e-5, rtol=1e-5), "mismatch vs reference (case 1)"

    # Case 2: lane-aligned path (head_dim=64 -> Df multiple of 128, pltpu.roll path).
    rope2 = RotaryEmbedding(hidden_size=512, num_heads=8, base=10000, max_len=512)
    q2 = jax.random.normal(key1, (2, 8, 16, rope2.head_dim), dtype=jnp.float32)
    out2 = rope2(q2)
    jax.block_until_ready(out2)
    ref2 = _reference(q2, rope2.cos_pos, rope2.sin_pos)
    assert out2.shape == q2.shape and out2.dtype == q2.dtype
    assert jnp.allclose(out2, ref2, atol=1e-5, rtol=1e-5), "mismatch vs reference (case 2)"

    print("KERNEL_OK")
</pallas_src>

<mosaic_0001>
module attributes {stable_mosaic.version = 11 : i64} {
  func.func @rope_kernel(%arg0: i32, %arg1: i32, %arg2: memref<8x1x64xf32, #tpu.memory_space<vmem>>, %arg3: memref<1x64xf32, #tpu.memory_space<vmem>>, %arg4: memref<1x64xf32, #tpu.memory_space<vmem>>, %arg5: memref<1x64xf32, #tpu.memory_space<vmem>>, %arg6: memref<8x1x64xf32, #tpu.memory_space<vmem>>) attributes {dimension_semantics = [#tpu.dimension_semantics<parallel>, #tpu.dimension_semantics<parallel>], iteration_bounds = array<i64: 1, 1>, scalar_prefetch = 0 : i64, scratch_operands = 0 : i64, tpu.core_type = #tpu.core_type<tc>, window_params = [{transform_indices = @transform_0, window_bounds = array<i64: 8, 1, 64>}, {transform_indices = @transform_1, window_bounds = array<i64: 1, 64>}, {transform_indices = @transform_2, window_bounds = array<i64: 1, 64>}, {transform_indices = @transform_3, window_bounds = array<i64: 1, 64>}, {transform_indices = @transform_4, window_bounds = array<i64: 8, 1, 64>}]} {
    %c0 = arith.constant 0 : index
    %c0_0 = arith.constant 0 : index
    %0 = vector.load %arg3[%c0, %c0_0] : memref<1x64xf32, #tpu.memory_space<vmem>>, vector<1x64xf32>
    %c0_1 = arith.constant 0 : index
    %c0_2 = arith.constant 0 : index
    %1 = vector.load %arg4[%c0_1, %c0_2] : memref<1x64xf32, #tpu.memory_space<vmem>>, vector<1x64xf32>
    %c0_3 = arith.constant 0 : index
    %c0_4 = arith.constant 0 : index
    %2 = vector.load %arg5[%c0_3, %c0_4] : memref<1x64xf32, #tpu.memory_space<vmem>>, vector<1x64xf32>
    %c0_i32 = arith.constant 0 : i32
    %3 = arith.index_cast %c0_i32 : i32 to index
    %c0_5 = arith.constant 0 : index
    %c0_6 = arith.constant 0 : index
    %4 = vector.load %arg2[%3, %c0_5, %c0_6] : memref<8x1x64xf32, #tpu.memory_space<vmem>>, vector<1x1x64xf32>
    %5 = vector.shape_cast %4 : vector<1x1x64xf32> to vector<1x64xf32>
    %6 = vector.extract_strided_slice %5 {offsets = [0, 63], sizes = [1, 1], strides = [1, 1]} : vector<1x64xf32> to vector<1x1xf32>
    %7 = vector.extract_strided_slice %5 {offsets = [0, 0], sizes = [1, 63], strides = [1, 1]} : vector<1x64xf32> to vector<1x63xf32>
    %8 = tpu.concatenate %6, %7 in 1 : vector<1x1xf32>, vector<1x63xf32> -> vector<1x64xf32>
    %9 = vector.extract_strided_slice %5 {offsets = [0, 1], sizes = [1, 63], strides = [1, 1]} : vector<1x64xf32> to vector<1x63xf32>
    %10 = vector.extract_strided_slice %5 {offsets = [0, 0], sizes = [1, 1], strides = [1, 1]} : vector<1x64xf32> to vector<1x1xf32>
    %11 = tpu.concatenate %9, %10 in 1 : vector<1x63xf32>, vector<1x1xf32> -> vector<1x64xf32>
    %12 = arith.mulf %5, %0 : vector<1x64xf32>
    %13 = arith.mulf %11, %1 : vector<1x64xf32>
    %14 = arith.addf %12, %13 : vector<1x64xf32>
    %15 = arith.mulf %8, %2 : vector<1x64xf32>
    %16 = arith.addf %14, %15 : vector<1x64xf32>
    %17 = arith.index_cast %c0_i32 : i32 to index
    %c0_7 = arith.constant 0 : index
    %c0_8 = arith.constant 0 : index
    %18 = vector.load %arg6[%17, %c0_7, %c0_8] : memref<8x1x64xf32, #tpu.memory_space<vmem>>, vector<1x1x64xf32>
    %19 = vector.shape_cast %18 : vector<1x1x64xf32> to vector<1x64xf32>
    %20 = vector.shape_cast %16 : vector<1x64xf32> to vector<1x1x64xf32>
    tpu.vector_store %arg6[%17, %c0_7, %c0_8], %20 {strides = array<i32>} : memref<8x1x64xf32, #tpu.memory_space<vmem>>, vector<1x1x64xf32>,
    %c1_i32 = arith.constant 1 : i32
    %21 = arith.index_cast %c1_i32 : i32 to index
    %c0_9 = arith.constant 0 : index
    %c0_10 = arith.constant 0 : index
    %22 = vector.load %arg2[%21, %c0_9, %c0_10] : memref<8x1x64xf32, #tpu.memory_space<vmem>>, vector<1x1x64xf32>
    %23 = vector.shape_cast %22 : vector<1x1x64xf32> to vector<1x64xf32>
    %24 = vector.extract_strided_slice %23 {offsets = [0, 63], sizes = [1, 1], strides = [1, 1]} : vector<1x64xf32> to vector<1x1xf32>
    %25 = vector.extract_strided_slice %23 {offsets = [0, 0], sizes = [1, 63], strides = [1, 1]} : vector<1x64xf32> to vector<1x63xf32>
    %26 = tpu.concatenate %24, %25 in 1 : vector<1x1xf32>, vector<1x63xf32> -> vector<1x64xf32>
    %27 = vector.extract_strided_slice %23 {offsets = [0, 1], sizes = [1, 63], strides = [1, 1]} : vector<1x64xf32> to vector<1x63xf32>
    %28 = vector.extract_strided_slice %23 {offsets = [0, 0], sizes = [1, 1], strides = [1, 1]} : vector<1x64xf32> to vector<1x1xf32>
    %29 = tpu.concatenate %27, %28 in 1 : vector<1x63xf32>, vector<1x1xf32> -> vector<1x64xf32>
    %30 = arith.mulf %23, %0 : vector<1x64xf32>
    %31 = arith.mulf %29, %1 : vector<1x64xf32>
    %32 = arith.addf %30, %31 : vector<1x64xf32>
    %33 = arith.mulf %26, %2 : vector<1x64xf32>
    %34 = arith.addf %32, %33 : vector<1x64xf32>
    %35 = arith.index_cast %c1_i32 : i32 to index
    %c0_11 = arith.constant 0 : index
    %c0_12 = arith.constant 0 : index
    %36 = vector.load %arg6[%35, %c0_11, %c0_12] : memref<8x1x64xf32, #tpu.memory_space<vmem>>, vector<1x1x64xf32>
    %37 = vector.shape_cast %36 : vector<1x1x64xf32> to vector<1x64xf32>
    %38 = vector.shape_cast %34 : vector<1x64xf32> to vector<1x1x64xf32>
    tpu.vector_store %arg6[%35, %c0_11, %c0_12], %38 {strides = array<i32>} : memref<8x1x64xf32, #tpu.memory_space<vmem>>, vector<1x1x64xf32>,
    %c2_i32 = arith.constant 2 : i32
    %39 = arith.index_cast %c2_i32 : i32 to index
    %c0_13 = arith.constant 0 : index
    %c0_14 = arith.constant 0 : index
    %40 = vector.load %arg2[%39, %c0_13, %c0_14] : memref<8x1x64xf32, #tpu.memory_space<vmem>>, vector<1x1x64xf32>
    %41 = vector.shape_cast %40 : vector<1x1x64xf32> to vector<1x64xf32>
    %42 = vector.extract_strided_slice %41 {offsets = [0, 63], sizes = [1, 1], strides = [1, 1]} : vector<1x64xf32> to vector<1x1xf32>
    %43 = vector.extract_strided_slice %41 {offsets = [0, 0], sizes = [1, 63], strides = [1, 1]} : vector<1x64xf32> to vector<1x63xf32>
    %44 = tpu.concatenate %42, %43 in 1 : vector<1x1xf32>, vector<1x63xf32> -> vector<1x64xf32>
    %45 = vector.extract_strided_slice %41 {offsets = [0, 1], sizes = [1, 63], strides = [1, 1]} : vector<1x64xf32> to vector<1x63xf32>
    %46 = vector.extract_strided_slice %41 {offsets = [0, 0], sizes = [1, 1], strides = [1, 1]} : vector<1x64xf32> to vector<1x1xf32>
    %47 = tpu.concatenate %45, %46 in 1 : vector<1x63xf32>, vector<1x1xf32> -> vector<1x64xf32>
    %48 = arith.mulf %41, %0 : vector<1x64xf32>
    %49 = arith.mulf %47, %1 : vector<1x64xf32>
    %50 = arith.addf %48, %49 : vector<1x64xf32>
    %51 = arith.mulf %44, %2 : vector<1x64xf32>
    %52 = arith.addf %50, %51 : vector<1x64xf32>
    %53 = arith.index_cast %c2_i32 : i32 to index
    %c0_15 = arith.constant 0 : index
    %c0_16 = arith.constant 0 : index
    %54 = vector.load %arg6[%53, %c0_15, %c0_16] : memref<8x1x64xf32, #tpu.memory_space<vmem>>, vector<1x1x64xf32>
    %55 = vector.shape_cast %54 : vector<1x1x64xf32> to vector<1x64xf32>
    %56 = vector.shape_cast %52 : vector<1x64xf32> to vector<1x1x64xf32>
    tpu.vector_store %arg6[%53, %c0_15, %c0_16], %56 {strides = array<i32>} : memref<8x1x64xf32, #tpu.memory_space<vmem>>, vector<1x1x64xf32>,
    %c3_i32 = arith.constant 3 : i32
    %57 = arith.index_cast %c3_i32 : i32 to index
    %c0_17 = arith.constant 0 : index
    %c0_18 = arith.constant 0 : index
    %58 = vector.load %arg2[%57, %c0_17, %c0_18] : memref<8x1x64xf32, #tpu.memory_space<vmem>>, vector<1x1x64xf32>
    %59 = vector.shape_cast %58 : vector<1x1x64xf32> to vector<1x64xf32>
    %60 = vector.extract_strided_slice %59 {offsets = [0, 63], sizes = [1, 1], strides = [1, 1]} : vector<1x64xf32> to vector<1x1xf32>
    %61 = vector.extract_strided_slice %59 {offsets = [0, 0], sizes = [1, 63], strides = [1, 1]} : vector<1x64xf32> to vector<1x63xf32>
    %62 = tpu.concatenate %60, %61 in 1 : vector<1x1xf32>, vector<1x63xf32> -> vector<1x64xf32>
    %63 = vector.extract_strided_slice %59 {offsets = [0, 1], sizes = [1, 63], strides = [1, 1]} : vector<1x64xf32> to vector<1x63xf32>
    %64 = vector.extract_strided_slice %59 {offsets = [0, 0], sizes = [1, 1], strides = [1, 1]} : vector<1x64xf32> to vector<1x1xf32>
    %65 = tpu.concatenate %63, %64 in 1 : vector<1x63xf32>, vector<1x1xf32> -> vector<1x64xf32>
    %66 = arith.mulf %59, %0 : vector<1x64xf32>
    %67 = arith.mulf %65, %1 : vector<1x64xf32>
    %68 = arith.addf %66, %67 : vector<1x64xf32>
    %69 = arith.mulf %62, %2 : vector<1x64xf32>
    %70 = arith.addf %68, %69 : vector<1x64xf32>
    %71 = arith.index_cast %c3_i32 : i32 to index
    %c0_19 = arith.constant 0 : index
    %c0_20 = arith.constant 0 : index
    %72 = vector.load %arg6[%71, %c0_19, %c0_20] : memref<8x1x64xf32, #tpu.memory_space<vmem>>, vector<1x1x64xf32>
    %73 = vector.shape_cast %72 : vector<1x1x64xf32> to vector<1x64xf32>
    %74 = vector.shape_cast %70 : vector<1x64xf32> to vector<1x1x64xf32>
    tpu.vector_store %arg6[%71, %c0_19, %c0_20], %74 {strides = array<i32>} : memref<8x1x64xf32, #tpu.memory_space<vmem>>, vector<1x1x64xf32>,
    %c4_i32 = arith.constant 4 : i32
    %75 = arith.index_cast %c4_i32 : i32 to index
    %c0_21 = arith.constant 0 : index
    %c0_22 = arith.constant 0 : index
    %76 = vector.load %arg2[%75, %c0_21, %c0_22] : memref<8x1x64xf32, #tpu.memory_space<vmem>>, vector<1x1x64xf32>
    %77 = vector.shape_cast %76 : vector<1x1x64xf32> to vector<1x64xf32>
    %78 = vector.extract_strided_slice %77 {offsets = [0, 63], sizes = [1, 1], strides = [1, 1]} : vector<1x64xf32> to vector<1x1xf32>
    %79 = vector.extract_strided_slice %77 {offsets = [0, 0], sizes = [1, 63], strides = [1, 1]} : vector<1x64xf32> to vector<1x63xf32>
    %80 = tpu.concatenate %78, %79 in 1 : vector<1x1xf32>, vector<1x63xf32> -> vector<1x64xf32>
    %81 = vector.extract_strided_slice %77 {offsets = [0, 1], sizes = [1, 63], strides = [1, 1]} : vector<1x64xf32> to vector<1x63xf32>
    %82 = vector.extract_strided_slice %77 {offsets = [0, 0], sizes = [1, 1], strides = [1, 1]} : vector<1x64xf32> to vector<1x1xf32>
    %83 = tpu.concatenate %81, %82 in 1 : vector<1x63xf32>, vector<1x1xf32> -> vector<1x64xf32>
    %84 = arith.mulf %77, %0 : vector<1x64xf32>
    %85 = arith.mulf %83, %1 : vector<1x64xf32>
    %86 = arith.addf %84, %85 : vector<1x64xf32>
    %87 = arith.mulf %80, %2 : vector<1x64xf32>
    %88 = arith.addf %86, %87 : vector<1x64xf32>
    %89 = arith.index_cast %c4_i32 : i32 to index
    %c0_23 = arith.constant 0 : index
    %c0_24 = arith.constant 0 : index
    %90 = vector.load %arg6[%89, %c0_23, %c0_24] : memref<8x1x64xf32, #tpu.memory_space<vmem>>, vector<1x1x64xf32>
    %91 = vector.shape_cast %90 : vector<1x1x64xf32> to vector<1x64xf32>
    %92 = vector.shape_cast %88 : vector<1x64xf32> to vector<1x1x64xf32>
    tpu.vector_store %arg6[%89, %c0_23, %c0_24], %92 {strides = array<i32>} : memref<8x1x64xf32, #tpu.memory_space<vmem>>, vector<1x1x64xf32>,
    %c5_i32 = arith.constant 5 : i32
    %93 = arith.index_cast %c5_i32 : i32 to index
    %c0_25 = arith.constant 0 : index
    %c0_26 = arith.constant 0 : index
    %94 = vector.load %arg2[%93, %c0_25, %c0_26] : memref<8x1x64xf32, #tpu.memory_space<vmem>>, vector<1x1x64xf32>
    %95 = vector.shape_cast %94 : vector<1x1x64xf32> to vector<1x64xf32>
    %96 = vector.extract_strided_slice %95 {offsets = [0, 63], sizes = [1, 1], strides = [1, 1]} : vector<1x64xf32> to vector<1x1xf32>
    %97 = vector.extract_strided_slice %95 {offsets = [0, 0], sizes = [1, 63], strides = [1, 1]} : vector<1x64xf32> to vector<1x63xf32>
    %98 = tpu.concatenate %96, %97 in 1 : vector<1x1xf32>, vector<1x63xf32> -> vector<1x64xf32>
    %99 = vector.extract_strided_slice %95 {offsets = [0, 1], sizes = [1, 63], strides = [1, 1]} : vector<1x64xf32> to vector<1x63xf32>
    %100 = vector.extract_strided_slice %95 {offsets = [0, 0], sizes = [1, 1], strides = [1, 1]} : vector<1x64xf32> to vector<1x1xf32>
    %101 = tpu.concatenate %99, %100 in 1 : vector<1x63xf32>, vector<1x1xf32> -> vector<1x64xf32>
    %102 = arith.mulf %95, %0 : vector<1x64xf32>
    %103 = arith.mulf %101, %1 : vector<1x64xf32>
    %104 = arith.addf %102, %103 : vector<1x64xf32>
    %105 = arith.mulf %98, %2 : vector<1x64xf32>
    %106 = arith.addf %104, %105 : vector<1x64xf32>
    %107 = arith.index_cast %c5_i32 : i32 to index
    %c0_27 = arith.constant 0 : index
    %c0_28 = arith.constant 0 : index
    %108 = vector.load %arg6[%107, %c0_27, %c0_28] : memref<8x1x64xf32, #tpu.memory_space<vmem>>, vector<1x1x64xf32>
    %109 = vector.shape_cast %108 : vector<1x1x64xf32> to vector<1x64xf32>
    %110 = vector.shape_cast %106 : vector<1x64xf32> to vector<1x1x64xf32>
    tpu.vector_store %arg6[%107, %c0_27, %c0_28], %110 {strides = array<i32>} : memref<8x1x64xf32, #tpu.memory_space<vmem>>, vector<1x1x64xf32>,
    %c6_i32 = arith.constant 6 : i32
    %111 = arith.index_cast %c6_i32 : i32 to index
    %c0_29 = arith.constant 0 : index
    %c0_30 = arith.constant 0 : index
    %112 = vector.load %arg2[%111, %c0_29, %c0_30] : memref<8x1x64xf32, #tpu.memory_space<vmem>>, vector<1x1x64xf32>
    %113 = vector.shape_cast %112 : vector<1x1x64xf32> to vector<1x64xf32>
    %114 = vector.extract_strided_slice %113 {offsets = [0, 63], sizes = [1, 1], strides = [1, 1]} : vector<1x64xf32> to vector<1x1xf32>
    %115 = vector.extract_strided_slice %113 {offsets = [0, 0], sizes = [1, 63], strides = [1, 1]} : vector<1x64xf32> to vector<1x63xf32>
    %116 = tpu.concatenate %114, %115 in 1 : vector<1x1xf32>, vector<1x63xf32> -> vector<1x64xf32>
    %117 = vector.extract_strided_slice %113 {offsets = [0, 1], sizes = [1, 63], strides = [1, 1]} : vector<1x64xf32> to vector<1x63xf32>
    %118 = vector.extract_strided_slice %113 {offsets = [0, 0], sizes = [1, 1], strides = [1, 1]} : vector<1x64xf32> to vector<1x1xf32>
    %119 = tpu.concatenate %117, %118 in 1 : vector<1x63xf32>, vector<1x1xf32> -> vector<1x64xf32>
    %120 = arith.mulf %113, %0 : vector<1x64xf32>
    %121 = arith.mulf %119, %1 : vector<1x64xf32>
    %122 = arith.addf %120, %121 : vector<1x64xf32>
    %123 = arith.mulf %116, %2 : vector<1x64xf32>
    %124 = arith.addf %122, %123 : vector<1x64xf32>
    %125 = arith.index_cast %c6_i32 : i32 to index
    %c0_31 = arith.constant 0 : index
    %c0_32 = arith.constant 0 : index
    %126 = vector.load %arg6[%125, %c0_31, %c0_32] : memref<8x1x64xf32, #tpu.memory_space<vmem>>, vector<1x1x64xf32>
    %127 = vector.shape_cast %126 : vector<1x1x64xf32> to vector<1x64xf32>
    %128 = vector.shape_cast %124 : vector<1x64xf32> to vector<1x1x64xf32>
    tpu.vector_store %arg6[%125, %c0_31, %c0_32], %128 {strides = array<i32>} : memref<8x1x64xf32, #tpu.memory_space<vmem>>, vector<1x1x64xf32>,
    %c7_i32 = arith.constant 7 : i32
    %129 = arith.index_cast %c7_i32 : i32 to index
    %c0_33 = arith.constant 0 : index
    %c0_34 = arith.constant 0 : index
    %130 = vector.load %arg2[%129, %c0_33, %c0_34] : memref<8x1x64xf32, #tpu.memory_space<vmem>>, vector<1x1x64xf32>
    %131 = vector.shape_cast %130 : vector<1x1x64xf32> to vector<1x64xf32>
    %132 = vector.extract_strided_slice %131 {offsets = [0, 63], sizes = [1, 1], strides = [1, 1]} : vector<1x64xf32> to vector<1x1xf32>
    %133 = vector.extract_strided_slice %131 {offsets = [0, 0], sizes = [1, 63], strides = [1, 1]} : vector<1x64xf32> to vector<1x63xf32>
    %134 = tpu.concatenate %132, %133 in 1 : vector<1x1xf32>, vector<1x63xf32> -> vector<1x64xf32>
    %135 = vector.extract_strided_slice %131 {offsets = [0, 1], sizes = [1, 63], strides = [1, 1]} : vector<1x64xf32> to vector<1x63xf32>
    %136 = vector.extract_strided_slice %131 {offsets = [0, 0], sizes = [1, 1], strides = [1, 1]} : vector<1x64xf32> to vector<1x1xf32>
    %137 = tpu.concatenate %135, %136 in 1 : vector<1x63xf32>, vector<1x1xf32> -> vector<1x64xf32>
    %138 = arith.mulf %131, %0 : vector<1x64xf32>
    %139 = arith.mulf %137, %1 : vector<1x64xf32>
    %140 = arith.addf %138, %139 : vector<1x64xf32>
    %141 = arith.mulf %134, %2 : vector<1x64xf32>
    %142 = arith.addf %140, %141 : vector<1x64xf32>
    %143 = arith.index_cast %c7_i32 : i32 to index
    %c0_35 = arith.constant 0 : index
    %c0_36 = arith.constant 0 : index
    %144 = vector.load %arg6[%143, %c0_35, %c0_36] : memref<8x1x64xf32, #tpu.memory_space<vmem>>, vector<1x1x64xf32>
    %145 = vector.shape_cast %144 : vector<1x1x64xf32> to vector<1x64xf32>
    %146 = vector.shape_cast %142 : vector<1x64xf32> to vector<1x1x64xf32>
    tpu.vector_store %arg6[%143, %c0_35, %c0_36], %146 {strides = array<i32>} : memref<8x1x64xf32, #tpu.memory_space<vmem>>, vector<1x1x64xf32>,
    %c8_i32 = arith.constant 8 : i32
    return
  }
  func.func @transform_0(%arg0: i32, %arg1: i32) -> (i32, i32, i32) {
    %c0_i32 = arith.constant 0 : i32
    %c0_i32_0 = arith.constant 0 : i32
    return %arg1, %arg0, %c0_i32 : i32, i32, i32
  }
  func.func @transform_1(%arg0: i32, %arg1: i32) -> (i32, i32) {
    %c0_i32 = arith.constant 0 : i32
    %c0_i32_0 = arith.constant 0 : i32
    return %arg0, %c0_i32 : i32, i32
  }
  func.func @transform_2(%arg0: i32, %arg1: i32) -> (i32, i32) {
    %c0_i32 = arith.constant 0 : i32
    %c0_i32_0 = arith.constant 0 : i32
    return %arg0, %c0_i32 : i32, i32
  }
  func.func @transform_3(%arg0: i32, %arg1: i32) -> (i32, i32) {
    %c0_i32 = arith.constant 0 : i32
    %c0_i32_0 = arith.constant 0 : i32
    return %arg0, %c0_i32 : i32, i32
  }
  func.func @transform_4(%arg0: i32, %arg1: i32) -> (i32, i32, i32) {
    %c0_i32 = arith.constant 0 : i32
    %c0_i32_0 = arith.constant 0 : i32
    return %arg1, %arg0, %c0_i32 : i32, i32, i32
  }
}

</mosaic_0001>

<bundles_post_ra>
// kernel: tpu_custom_call.1
= control target key start
LH: loop header
LB: loop body
LE: loop exit
PB: predicated region body
PF: predicated region fallthrough
CT: control target
= control target key end

     0   :  { %9 = vsyncpa [#allocation3], 0  ;;  %s481_s0 = inlined_call_operand.hbm [shape: f32[8,1,64], index: 0, kind: input, shape index: {}]   ;;  %s482_s1 = inlined_call_operand.vmem [shape: f32[1,64], index: 1, kind: input, shape index: {}]   ;;  %s483_s2 = inlined_call_operand.vmem [shape: f32[1,64], index: 2, kind: input, shape index: {}]   ;;  %s484_s3 = inlined_call_operand.vmem [shape: f32[1,64], index: 3, kind: input, shape index: {}]   ;;  %s485_s4 = inlined_call_operand.hbm [shape: f32[8,1,64], index: 4, kind: output, shape index: {}]  }
   0x1   :  { %10 = vsyncpa [#allocation4], 0  ;;  %s328_s15 = smov [#allocation2]  }
   0x2   :  { %s16_s16 = sshll.u32 %s328_s15, 4  ;;  %s17_s16 = int_to_ptr.vmem [resolvable:$true] %s16_s16 }
   0x3   :  { %s292_s17 = scalar_lea.vmem %s17_s16, 128  ;;  %p297_p1 = scmp.lt.s32.totalorder %s17_s16, %s17_s16 }
   0x4   :  { %p293_p0 = scmp.ne.s32.totalorder %s17_s16, %s292_s17  ;;  %p298_p2 = scmp.lt.s32.totalorder %s292_s17, %s292_s17 }
   0x6   :  { %p299_p3 = por %p298_p2, %p297_p1 }
   0x8   :  { %p300_p4 = pnand %p299_p3, %p293_p0 }
   0xa   :  { %303 = shalt.err (!%p300_p4)
}
   0xb   :  { %s329_s18 = smov 16   ;;  %s330_s19 = smov 1  }
   0xc   :  { %22 = dma.hbm_to_vmem [thread:$0]  %s481_s0, 128, %s17_s16, [#allocation3], %s329_s18, %s329_s18, %s330_s19  }
   0xd   :  { %324 = dma.done.wait [#allocation3], 128  }
   0xe   :  { %325 = vsyncadd [#allocation3], 4294967168  ;;  %v37_v0 = vlaneseq  ;;  %v366_v3 = vld [vmem:[#allocation2 + $0x1] sm:$0x1]  ;;  %v368_v4 = vld [vmem:[#allocation2] sm:$0x1] }
   0xf   :  { %s331_s22 = smov 127   ;;  %v372_v7 = vld [vmem:[#allocation2 + $0x2] sm:$0x1]  ;;  %s332_s23 = smov 63   ;;  %v375_v9 = vld [vmem:[#allocation2 + $0x3] sm:$0x1] }
  0x10   :  { %v38_v1 = vshrl.u32 %v37_v0, 7  ;;  %v378_v11 = vld [vmem:[#allocation2 + $0x4] sm:$0x1]  ;;  %v381_v13 = vld [vmem:[#allocation2 + $0x5] sm:$0x1]  ;;  %s333_s0 = smov 65  }
  0x11   :  { %v384_v15 = vld [vmem:[#allocation2 + $0x6] sm:$0x1]  ;;  %v387_v17 = vld [vmem:[#allocation2 + $0x7] sm:$0x1]  ;;  %vm55_vm0 = vcmask 515072   ;;  %vm47_vm1 = vcmask 7168  }
  0x12   :  { %v39_v2 = vsub.s32 0, %v38_v1  ;;  %v401_v33 = vld [vmem:[%s482_s1] sm:$0x1]  ;;  %vm62_vm2 = vcmask 516096  }
  0x13   :  { %v406_v34 = vld [vmem:[%s483_s2] sm:$0x1]  ;;  %v57_v38 = vmul.f32 %v368_v4, %v401_v33  ;;  %v85_v45 = vmul.f32 %v366_v3, %v401_v33  ;;  %v113_v55 = vmul.f32 %v372_v7, %v401_v33  ;;  %v141_v0 = vmul.f32 %v375_v9, %v401_v33  ;;  %s334_s2 = smov [#allocation5]  }
  0x14   :  { %v70_v5 = vrot.slane %v366_v3, %v39_v2  ;;  %v40_v6 = vrot.slane %v368_v4, %v39_v2  ;;  %v98_v8 = vrot.slane %v372_v7, %v39_v2  ;;  %v126_v10 = vrot.slane %v375_v9, %v39_v2  ;;  %v420_v41 = vld [vmem:[%s484_s3] sm:$0x1]  ;;  %s265_s3 = sshll.u32 %s334_s2, 4  ;;  %s266_s3 = int_to_ptr.vmem [resolvable:$true] %s265_s3 }
  0x15   :  { %v154_v12 = vrot.slane %v378_v11, %v39_v2  ;;  %v182_v14 = vrot.slane %v381_v13, %v39_v2  ;;  %v210_v16 = vrot.slane %v384_v15, %v39_v2  ;;  %v238_v18 = vrot.slane %v387_v17, %v39_v2  ;;  %s304_s29 = scalar_lea.vmem %s266_s3, 128  ;;  %p309_p6 = scmp.lt.s32.totalorder %s266_s3, %s266_s3 }
  0x16   :  { %78 = vrot.lane.b32.xlu1 %v70_v5, %s331_s22  ;;  %49 = vrot.lane.b32.xlu0 %v40_v6, %s331_s22  ;;  %p305_p5 = scmp.ne.s32.totalorder %s266_s3, %s304_s29  ;;  %p310_p7 = scmp.lt.s32.totalorder %s304_s29, %s304_s29 }
  0x18   :  { %p311_p8 = por %p310_p7, %p309_p6 }
  0x1a   :  { %81 = vrot.lane.b32.xlu1 %v70_v5, %s332_s23  ;;  %52 = vrot.lane.b32.xlu0 %v40_v6, %s332_s23  ;;  %p312_p9 = pnand %p311_p8, %p305_p5 }
  0x1e   :  { %109 = vrot.lane.b32.xlu1 %v98_v8, %s332_s23  ;;  %106 = vrot.lane.b32.xlu0 %v98_v8, %s331_s22 }
  0x22   :  { %137 = vrot.lane.b32.xlu1 %v126_v10, %s332_s23  ;;  %134 = vrot.lane.b32.xlu0 %v126_v10, %s331_s22 }
  0x26   :  { %165 = vrot.lane.b32.xlu1 %v154_v12, %s332_s23  ;;  %162 = vrot.lane.b32.xlu0 %v154_v12, %s331_s22 }
  0x2a   :  { %193 = vrot.lane.b32.xlu1 %v182_v14, %s332_s23  ;;  %190 = vrot.lane.b32.xlu0 %v182_v14, %s331_s22 }
  0x2e   :  { %221 = vrot.lane.b32.xlu1 %v210_v16, %s332_s23  ;;  %218 = vrot.lane.b32.xlu0 %v210_v16, %s331_s22 }
  0x32   :  { %249 = vrot.lane.b32.xlu1 %v238_v18, %s332_s23  ;;  %246 = vrot.lane.b32.xlu0 %v238_v18, %s331_s22 }
  0x36   :  { %44 = vrot.lane.b32.xlu1 %v40_v6, %s330_s19  ;;  %41 = vrot.lane.b32.xlu0 %v40_v6, %s333_s0 }
  0x3a   :  { %74 = vrot.lane.b32.xlu1 %v70_v5, %s330_s19  ;;  %71 = vrot.lane.b32.xlu0 %v70_v5, %s333_s0 }
  0x3e   :  { %102 = vrot.lane.b32.xlu1 %v98_v8, %s330_s19  ;;  %99 = vrot.lane.b32.xlu0 %v98_v8, %s333_s0 }
  0x42   :  { %130 = vrot.lane.b32.xlu1 %v126_v10, %s330_s19  ;;  %127 = vrot.lane.b32.xlu0 %v126_v10, %s333_s0  ;;  %v169_v10 = vmul.f32 %v378_v11, %v401_v33 }
  0x46   :  { %158 = vrot.lane.b32.xlu1 %v154_v12, %s330_s19  ;;  %155 = vrot.lane.b32.xlu0 %v154_v12, %s333_s0 }
  0x4a   :  { %186 = vrot.lane.b32.xlu1 %v182_v14, %s330_s19  ;;  %183 = vrot.lane.b32.xlu0 %v182_v14, %s333_s0 }
  0x4e   :  { %214 = vrot.lane.b32.xlu1 %v210_v16, %s330_s19  ;;  %211 = vrot.lane.b32.xlu0 %v210_v16, %s333_s0 }
  0x52   :  { %242 = vrot.lane.b32.xlu1 %v238_v18, %s330_s19  ;;  %239 = vrot.lane.b32.xlu0 %v238_v18, %s333_s0 }
  0x88   :  { %v79_v19 = vpop.permute.xlu1 %78  ;;  %v50_v20 = vpop.permute.xlu0 %49 }
  0x8c   :  { %v82_v21 = vpop.permute.xlu1 %81  ;;  %v53_v22 = vpop.permute.xlu0 %52 }
  0x8d   :  { %v56_v35 = vsel %vm55_vm0, %v50_v20, %v53_v22  ;;  %v84_v40 = vsel %vm55_vm0, %v79_v19, %v82_v21  ;;  %v197_v22 = vmul.f32 %v381_v13, %v401_v33 }
  0x8e   :  { %v58_v39 = vmul.f32 %v56_v35, %v406_v34  ;;  %v86_v46 = vmul.f32 %v84_v40, %v406_v34 }
  0x90   :  { %v110_v23 = vpop.permute.xlu1 %109  ;;  %v107_v24 = vpop.permute.xlu0 %106  ;;  %v59_v47 = vadd.f32 %v58_v39, %v57_v38  ;;  %v87_v54 = vadd.f32 %v86_v46, %v85_v45 }
  0x91   :  { %v112_v49 = vsel %vm55_vm0, %v107_v24, %v110_v23 }
  0x92   :  { %v114_v56 = vmul.f32 %v112_v49, %v406_v34 }
  0x94   :  { %v138_v25 = vpop.permute.xlu1 %137  ;;  %v135_v26 = vpop.permute.xlu0 %134  ;;  %v115_v63 = vadd.f32 %v114_v56, %v113_v55 }
  0x95   :  { %v140_v58 = vsel %vm55_vm0, %v135_v26, %v138_v25 }
  0x96   :  { %v142_v1 = vmul.f32 %v140_v58, %v406_v34 }
  0x98   :  { %v166_v27 = vpop.permute.xlu1 %165  ;;  %v163_v28 = vpop.permute.xlu0 %162  ;;  %v143_v8 = vadd.f32 %v142_v1, %v141_v0 }
  0x99   :  { %v168_v3 = vsel %vm55_vm0, %v163_v28, %v166_v27 }
  0x9a   :  { %v170_v12 = vmul.f32 %v168_v3, %v406_v34 }
  0x9c   :  { %v194_v29 = vpop.permute.xlu1 %193  ;;  %v191_v30 = vpop.permute.xlu0 %190  ;;  %v171_v21 = vadd.f32 %v170_v12, %v169_v10 }
  0x9d   :  { %v196_v14 = vsel %vm55_vm0, %v191_v30, %v194_v29  ;;  %v225_v30 = vmul.f32 %v384_v15, %v401_v33 }
  0x9e   :  { %v198_v23 = vmul.f32 %v196_v14, %v406_v34 }
  0xa0   :  { %v222_v31 = vpop.permute.xlu1 %221  ;;  %v219_v32 = vpop.permute.xlu0 %218  ;;  %v199_v29 = vadd.f32 %v198_v23, %v197_v22 }
  0xa1   :  { %v224_v24 = vsel %vm55_vm0, %v219_v32, %v222_v31 }
  0xa2   :  { %v226_v35 = vmul.f32 %v224_v24, %v406_v34 }
  0xa4   :  { %v409_v36 = vpop.permute.xlu1 %249  ;;  %v411_v37 = vpop.permute.xlu0 %246 }
  0xa5   :  { %v252_v38 = vsel %vm55_vm0, %v411_v37, %v409_v36 }
  0xa6   :  { %v254_v15 = vmul.f32 %v252_v38, %v406_v34 }
  0xa8   :  { %v45_v42 = vpop.permute.xlu1 %44  ;;  %v42_v43 = vpop.permute.xlu0 %41 }
  0xa9   :  { %v48_v44 = vsel %vm47_vm1, %v42_v43, %v45_v42  ;;  %v227_v42 = vadd.f32 %v226_v35, %v225_v30  ;;  %v253_v43 = vmul.f32 %v387_v17, %v401_v33 }
  0xaa   :  { %v60_v48 = vmul.f32 %v48_v44, %v420_v41 }
  0xab   :  { %v255_v37 = vadd.f32 %v254_v15, %v253_v43 }
  0xac   :  { %v61_v50 = vadd.f32 %v60_v48, %v59_v47  ;;  %v75_v51 = vpop.permute.xlu1 %74  ;;  %v72_v52 = vpop.permute.xlu0 %71 }
  0xad   :  { %v77_v53 = vsel %vm47_vm1, %v72_v52, %v75_v51 }
  0xae   :  { %63 = vst.msk [vmem:[#allocation5] sm:$0x1] %vm62_vm2, %v61_v50  ;;  %v88_v57 = vmul.f32 %v77_v53, %v420_v41 }
  0xb0   :  { %v89_v59 = vadd.f32 %v88_v57, %v87_v54  ;;  %v103_v60 = vpop.permute.xlu1 %102  ;;  %v100_v61 = vpop.permute.xlu0 %99 }
  0xb1   :  { %v105_v62 = vsel %vm47_vm1, %v100_v61, %v103_v60 }
  0xb2   :  { %91 = vst.msk [vmem:[#allocation5 + $0x1] sm:$0x1] %vm62_vm2, %v89_v59  ;;  %v116_v2 = vmul.f32 %v105_v62, %v420_v41 }
  0xb4   :  { %v117_v4 = vadd.f32 %v116_v2, %v115_v63  ;;  %v131_v5 = vpop.permute.xlu1 %130  ;;  %v128_v6 = vpop.permute.xlu0 %127 }
  0xb5   :  { %v133_v7 = vsel %vm47_vm1, %v128_v6, %v131_v5 }
  0xb6   :  { %119 = vst.msk [vmem:[#allocation5 + $0x2] sm:$0x1] %vm62_vm2, %v117_v4  ;;  %v144_v9 = vmul.f32 %v133_v7, %v420_v41 }
  0xb8   :  { %v145_v16 = vadd.f32 %v144_v9, %v143_v8  ;;  %v159_v18 = vpop.permute.xlu1 %158  ;;  %v156_v19 = vpop.permute.xlu0 %155 }
  0xb9   :  { %v161_v20 = vsel %vm47_vm1, %v156_v19, %v159_v18 }
  0xba   :  { %147 = vst.msk [vmem:[#allocation5 + $0x3] sm:$0x1] %vm62_vm2, %v145_v16  ;;  %v172_v11 = vmul.f32 %v161_v20, %v420_v41 }
  0xbc   :  { %v173_v25 = vadd.f32 %v172_v11, %v171_v21  ;;  %v187_v26 = vpop.permute.xlu1 %186  ;;  %v184_v27 = vpop.permute.xlu0 %183 }
  0xbd   :  { %v189_v28 = vsel %vm47_vm1, %v184_v27, %v187_v26 }
  0xbe   :  { %175 = vst.msk [vmem:[#allocation5 + $0x4] sm:$0x1] %vm62_vm2, %v173_v25  ;;  %v200_v13 = vmul.f32 %v189_v28, %v420_v41 }
  0xc0   :  { %v201_v31 = vadd.f32 %v200_v13, %v199_v29  ;;  %v215_v32 = vpop.permute.xlu1 %214  ;;  %v212_v39 = vpop.permute.xlu0 %211 }
  0xc1   :  { %v217_v40 = vsel %vm47_vm1, %v212_v39, %v215_v32 }
  0xc2   :  { %203 = vst.msk [vmem:[#allocation5 + $0x5] sm:$0x1] %vm62_vm2, %v201_v31  ;;  %v228_v44 = vmul.f32 %v217_v40, %v420_v41 }
  0xc4   :  { %v229_v45 = vadd.f32 %v228_v44, %v227_v42  ;;  %v243_v46 = vpop.permute.xlu1 %242  ;;  %v240_v47 = vpop.permute.xlu0 %239 }
  0xc5   :  { %v245_v36 = vsel %vm47_vm1, %v240_v47, %v243_v46 }
  0xc6   :  { %231 = vst.msk [vmem:[#allocation5 + $0x6] sm:$0x1] %vm62_vm2, %v229_v45  ;;  %v256_v48 = vmul.f32 %v245_v36, %v420_v41 }
  0xc8   :  { %v257_v49 = vadd.f32 %v256_v48, %v255_v37 }
  0xca   :  { %259 = vst.msk [vmem:[#allocation5 + $0x7] sm:$0x1] %vm62_vm2, %v257_v49 }
  0xcb   :  { %315 = shalt.err (!%p312_p9)
}
  0xcc   :  { %271 = dma.vmem_to_hbm [thread:$0]  %s266_s3, 128, %s485_s4, [#allocation4], %s329_s18, %s329_s18, %s330_s19  }
  0xcd   :  { %326 = dma.done.wait [#allocation4], 128  }
  0xce   :  { %327 = vsyncadd [#allocation4], 4294967168 }
  0xcf   :  { %275 = vsyncpa [#allocation3], 1 }
  0xd0   :  { %276 = vsyncpa [#allocation4], 1 }

</bundles_post_ra>
